<compile_context>
chip_gen: v7x
topology: tpu7x:2x2x1
jax: 0.10.0
libtpu: 0.0.40
codegen_flags: <defaults>
</compile_context>

<pallas_src>
import functools

import jax
import jax.numpy as jnp
from jax import lax
from jax.experimental import pallas as pl
from jax.experimental.pallas import tpu as pltpu


# ----------------------------------------------------------------------------
# Kernel 1: conv as (Cout, K) @ (K, TM) matmul with fused BN-stats epilogue
# ----------------------------------------------------------------------------
def _conv_stats_kernel(x_ref, w_ref, y_ref, sum_ref, sq_ref):
    # x_ref : (K, TM)      im2col patch columns for TM output positions
    # w_ref : (Cout, K)    flattened conv weight
    # y_ref : (Cout, TM)   conv output (lane axis = positions -> dense stores)
    # sum_ref / sq_ref : (Cout, 1) per-batch per-channel accumulators (resident)
    @pl.when(pl.program_id(1) == 0)
    def _():
        sum_ref[...] = jnp.zeros_like(sum_ref)
        sq_ref[...] = jnp.zeros_like(sq_ref)

    y = jnp.dot(w_ref[...], x_ref[...], preferred_element_type=jnp.float32)
    y_ref[...] = y
    sum_ref[...] += jnp.sum(y, axis=-1, keepdims=True)
    sq_ref[...] += jnp.sum(y * y, axis=-1, keepdims=True)


# ----------------------------------------------------------------------------
# Kernel 2: apply folded batch-norm scale/shift + ReLU (elementwise)
# ----------------------------------------------------------------------------
def _bn_relu_kernel(y_ref, scale_ref, shift_ref, o_ref):
    # y_ref / o_ref : (Cout, TM);  scale/shift : (Cout, 1) broadcast along lanes
    o_ref[...] = jnp.maximum(y_ref[...] * scale_ref[...] + shift_ref[...], 0.0)


# ----------------------------------------------------------------------------
# Plain-JAX glue
# ----------------------------------------------------------------------------
def _im2col_t(x_nchw, k_size, stride, padding, dilation=1):
    """Extract conv patches -> (N, Cin*KH*KW, OH*OW) (positions on the lane axis)."""
    n, cin, h, w = x_nchw.shape
    kh = kw = k_size
    oh = (h + 2 * padding - dilation * (kh - 1) - 1) // stride + 1
    ow = (w + 2 * padding - dilation * (kw - 1) - 1) // stride + 1
    xp = jnp.pad(x_nchw, ((0, 0), (0, 0), (padding, padding), (padding, padding)))
    cols = []
    for i in range(kh):
        for j in range(kw):
            r0, c0 = i * dilation, j * dilation
            cols.append(
                xp[:, :, r0 : r0 + stride * oh : stride, c0 : c0 + stride * ow : stride]
            )
    # (KH*KW, N, Cin, OH, OW) -> (N, Cin, KH*KW, OH, OW) -> (N, K, OH*OW)
    patches = jnp.stack(cols, axis=0).transpose(1, 2, 0, 3, 4)
    return patches.reshape(n, cin * kh * kw, oh * ow), (oh, ow)


def _pick_tile(mpos, cap=512):
    """Largest lane tile <= cap that divides OH*OW and is a multiple of 128."""
    if mpos % 128 != 0:
        return mpos                      # full-extent block (always legal)
    tm = 128
    for cand in range(256, min(mpos, cap) + 1, 128):
        if mpos % cand == 0:
            tm = cand
    return tm


@functools.partial(
    jax.jit, static_argnames=("k_size", "stride", "padding", "dilation", "eps"))
def conv2d_bn_relu(x_nchw, weight, bias, gamma, beta, *, k_size, stride, padding,
                   dilation=1, eps=1e-5):
    """Forward of conv2DBatchNormRelu (bias=True, with_bn=True, BN in train mode).

    `bias` is accepted for API parity but never used: a per-channel conv bias
    followed by training-mode BatchNorm cancels exactly (it only shifts the
    per-channel mean, which BN immediately subtracts).
    """
    del bias
    cout, cin, kh, kw = weight.shape
    n = x_nchw.shape[0]
    patches, (oh, ow) = _im2col_t(x_nchw, k_size, stride, padding, dilation)
    _, k, mpos = patches.shape
    w_mat = weight.reshape(cout, cin * kh * kw)            # (Cout, K)

    tm = _pick_tile(mpos)
    mt = mpos // tm
    vmem_limit = 32 * 1024 * 1024

    # --- conv matmul + fused per-batch BN statistics -------------------------
    conv_out, psum, psq = pl.pallas_call(
        _conv_stats_kernel,
        out_shape=(jax.ShapeDtypeStruct((n, cout, mpos), jnp.float32),
                   jax.ShapeDtypeStruct((n, cout, 1), jnp.float32),
                   jax.ShapeDtypeStruct((n, cout, 1), jnp.float32)),
        grid_spec=pltpu.PrefetchScalarGridSpec(
            num_scalar_prefetch=0,
            grid=(n, mt),
            in_specs=[
                pl.BlockSpec((None, k, tm), lambda b, m: (b, 0, m)),
                pl.BlockSpec((cout, k), lambda b, m: (0, 0)),
            ],
            out_specs=(
                pl.BlockSpec((None, cout, tm), lambda b, m: (b, 0, m)),
                pl.BlockSpec((None, cout, 1), lambda b, m: (b, 0, 0)),
                pl.BlockSpec((None, cout, 1), lambda b, m: (b, 0, 0)),
            ),
        ),
        compiler_params=pltpu.CompilerParams(
            dimension_semantics=("parallel", "arbitrary"),
            vmem_limit_bytes=vmem_limit),
    )(patches, w_mat)

    # tiny per-channel folding math (glue; N*Cout scalars)
    m_total = n * mpos
    ch_sum = jnp.sum(psum, axis=0)                         # (Cout, 1)
    ch_sq = jnp.sum(psq, axis=0)                           # (Cout, 1)
    mean = ch_sum / m_total
    var = ch_sq / m_total - mean * mean                    # biased var (PyTorch BN)
    scale = gamma.reshape(cout, 1) * lax.rsqrt(var + eps)
    shift = beta.reshape(cout, 1) - mean * scale

    # --- BN apply + ReLU ------------------------------------------------------
    y = pl.pallas_call(
        _bn_relu_kernel,
        out_shape=jax.ShapeDtypeStruct((n, cout, mpos), jnp.float32),
        grid_spec=pltpu.PrefetchScalarGridSpec(
            num_scalar_prefetch=0,
            grid=(n, mt),
            in_specs=[
                pl.BlockSpec((None, cout, tm), lambda b, m: (b, 0, m)),
                pl.BlockSpec((cout, 1), lambda b, m: (0, 0)),
                pl.BlockSpec((cout, 1), lambda b, m: (0, 0)),
            ],
            out_specs=pl.BlockSpec((None, cout, tm), lambda b, m: (b, 0, m)),
        ),
        compiler_params=pltpu.CompilerParams(
            dimension_semantics=("parallel", "parallel"),
            vmem_limit_bytes=vmem_limit),
    )(conv_out, scale, shift)

    # (N, Cout, OH*OW) is already NCHW-ordered: free reshape, no transpose.
    return y.reshape(n, cout, oh, ow)


# ----------------------------------------------------------------------------
# Pure-JAX reference (PyTorch Conv2d -> BatchNorm2d(train) -> ReLU)
# ----------------------------------------------------------------------------
def _reference(x, weight, bias, gamma, beta, *, stride, padding, dilation=1,
               eps=1e-5):
    y = lax.conv_general_dilated(
        x, weight, window_strides=(stride, stride),
        padding=[(padding, padding), (padding, padding)],
        rhs_dilation=(dilation, dilation),
        dimension_numbers=("NCHW", "OIHW", "NCHW"))
    y = y + bias.reshape(1, -1, 1, 1)
    mean = jnp.mean(y, axis=(0, 2, 3), keepdims=True)
    var = jnp.mean((y - mean) ** 2, axis=(0, 2, 3), keepdims=True)
    y = (y - mean) * lax.rsqrt(var + eps)
    y = y * gamma.reshape(1, -1, 1, 1) + beta.reshape(1, -1, 1, 1)
    return jnp.maximum(y, 0.0)


if __name__ == "__main__":
    # conv2DBatchNormRelu(in_channels=4, n_filters=8, k_size=3, stride=1,
    #                     padding=1, bias=True, with_bn=True)
    N, CIN, H, W = 2, 4, 16, 16
    COUT, KS, STRIDE, PAD = 8, 3, 1, 1

    key = jax.random.PRNGKey(0)
    kx, kw, kb = jax.random.split(key, 3)
    x = jax.random.normal(kx, (N, CIN, H, W), dtype=jnp.float32)
    weight = jax.random.normal(kw, (COUT, CIN, KS, KS), dtype=jnp.float32) * 0.1
    bias = jax.random.normal(kb, (COUT,), dtype=jnp.float32) * 0.1
    gamma = jnp.ones((COUT,), dtype=jnp.float32)   # PyTorch BN default init
    beta = jnp.zeros((COUT,), dtype=jnp.float32)

    out = conv2d_bn_relu(x, weight, bias, gamma, beta,
                         k_size=KS, stride=STRIDE, padding=PAD)
    out = jax.block_until_ready(out)

    ref = _reference(x, weight, bias, gamma, beta, stride=STRIDE, padding=PAD)
    assert out.shape == (N, COUT, H, W)
    assert jnp.allclose(out, ref, atol=1e-4, rtol=1e-4), "mismatch vs reference"

    print("KERNEL_OK")
</pallas_src>

<mosaic_0001>
module attributes {stable_mosaic.version = 11 : i64} {
  func.func @_conv_stats_kernel(%arg0: i32, %arg1: i32, %arg2: memref<1x36x256xf32, #tpu.memory_space<vmem>>, %arg3: memref<8x36xf32, #tpu.memory_space<vmem>>, %arg4: memref<1x8x256xf32, #tpu.memory_space<vmem>>, %arg5: memref<1x8x1xf32, #tpu.memory_space<vmem>>, %arg6: memref<1x8x1xf32, #tpu.memory_space<vmem>>) attributes {dimension_semantics = [#tpu.dimension_semantics<parallel>, #tpu.dimension_semantics<arbitrary>], iteration_bounds = array<i64: 2, 1>, scalar_prefetch = 0 : i64, scratch_operands = 0 : i64, tpu.core_type = #tpu.core_type<tc>, window_params = [{transform_indices = @transform_0, window_bounds = array<i64: 1, 36, 256>}, {pipeline_mode = #tpu.pipeline_mode<synchronous>, transform_indices = @transform_1, window_bounds = array<i64: 8, 36>}, {transform_indices = @transform_2, window_bounds = array<i64: 1, 8, 256>}, {transform_indices = @transform_3, window_bounds = array<i64: 1, 8, 1>}, {transform_indices = @transform_4, window_bounds = array<i64: 1, 8, 1>}]} {
    %c0_i32 = arith.constant 0 : i32
    %0 = arith.cmpi eq, %arg1, %c0_i32 : i32
    %1 = arith.extui %0 : i1 to i32
    %c0_i32_0 = arith.constant 0 : i32
    %2 = arith.cmpi ne, %1, %c0_i32_0 : i32
    scf.if %2 {
      %cst_22 = arith.constant 0.000000e+00 : f32
      %27 = vector.broadcast %cst_22 : f32 to vector<8x1xf32>
      %c0_23 = arith.constant 0 : index
      %c0_24 = arith.constant 0 : index
      %c0_25 = arith.constant 0 : index
      %28 = vector.load %arg5[%c0_23, %c0_24, %c0_25] : memref<1x8x1xf32, #tpu.memory_space<vmem>>, vector<1x8x1xf32>
      %29 = vector.shape_cast %28 : vector<1x8x1xf32> to vector<8x1xf32>
      %30 = vector.shape_cast %27 : vector<8x1xf32> to vector<1x8x1xf32>
      tpu.vector_store %arg5[%c0_23, %c0_24, %c0_25], %30 {strides = array<i32>} : memref<1x8x1xf32, #tpu.memory_space<vmem>>, vector<1x8x1xf32>,
      %cst_26 = arith.constant 0.000000e+00 : f32
      %31 = vector.broadcast %cst_26 : f32 to vector<8x1xf32>
      %c0_27 = arith.constant 0 : index
      %c0_28 = arith.constant 0 : index
      %c0_29 = arith.constant 0 : index
      %32 = vector.load %arg6[%c0_27, %c0_28, %c0_29] : memref<1x8x1xf32, #tpu.memory_space<vmem>>, vector<1x8x1xf32>
      %33 = vector.shape_cast %32 : vector<1x8x1xf32> to vector<8x1xf32>
      %34 = vector.shape_cast %31 : vector<8x1xf32> to vector<1x8x1xf32>
      tpu.vector_store %arg6[%c0_27, %c0_28, %c0_29], %34 {strides = array<i32>} : memref<1x8x1xf32, #tpu.memory_space<vmem>>, vector<1x8x1xf32>,
    } else {
    }
    %c0 = arith.constant 0 : index
    %c0_1 = arith.constant 0 : index
    %3 = vector.load %arg3[%c0, %c0_1] : memref<8x36xf32, #tpu.memory_space<vmem>>, vector<8x36xf32>
    %c0_2 = arith.constant 0 : index
    %c0_3 = arith.constant 0 : index
    %c0_4 = arith.constant 0 : index
    %4 = vector.load %arg2[%c0_2, %c0_3, %c0_4] : memref<1x36x256xf32, #tpu.memory_space<vmem>>, vector<1x36x256xf32>
    %5 = vector.shape_cast %4 : vector<1x36x256xf32> to vector<36x256xf32>
    %cst = arith.constant dense<0.000000e+00> : vector<8x256xf32>
    %6 = tpu.matmul %3, %5, %cst {dimension_numbers = #tpu.dot_dimension_numbers<[1], [0], [0], [1], [0, 0, 1, 1], [], []>} : vector<8x36xf32>, vector<36x256xf32>, vector<8x256xf32> -> vector<8x256xf32>
    %c0_5 = arith.constant 0 : index
    %c0_6 = arith.constant 0 : index
    %c0_7 = arith.constant 0 : index
    %7 = vector.load %arg4[%c0_5, %c0_6, %c0_7] : memref<1x8x256xf32, #tpu.memory_space<vmem>>, vector<1x8x256xf32>
    %8 = vector.shape_cast %7 : vector<1x8x256xf32> to vector<8x256xf32>
    %9 = vector.shape_cast %6 : vector<8x256xf32> to vector<1x8x256xf32>
    tpu.vector_store %arg4[%c0_5, %c0_6, %c0_7], %9 {strides = array<i32>} : memref<1x8x256xf32, #tpu.memory_space<vmem>>, vector<1x8x256xf32>,
    %c0_8 = arith.constant 0 : index
    %c0_9 = arith.constant 0 : index
    %c0_10 = arith.constant 0 : index
    %10 = vector.load %arg5[%c0_8, %c0_9, %c0_10] : memref<1x8x1xf32, #tpu.memory_space<vmem>>, vector<1x8x1xf32>
    %11 = vector.shape_cast %10 : vector<1x8x1xf32> to vector<8x1xf32>
    %cst_11 = arith.constant dense<0.000000e+00> : vector<8xf32>
    %12 = vector.multi_reduction <add>, %6, %cst_11 [1] : vector<8x256xf32> to vector<8xf32>
    %13 = vector.shape_cast %12 : vector<8xf32> to vector<8x1xf32>
    %14 = arith.addf %11, %13 : vector<8x1xf32>
    %c0_12 = arith.constant 0 : index
    %c0_13 = arith.constant 0 : index
    %c0_14 = arith.constant 0 : index
    %15 = vector.load %arg5[%c0_12, %c0_13, %c0_14] : memref<1x8x1xf32, #tpu.memory_space<vmem>>, vector<1x8x1xf32>
    %16 = vector.shape_cast %15 : vector<1x8x1xf32> to vector<8x1xf32>
    %17 = vector.shape_cast %14 : vector<8x1xf32> to vector<1x8x1xf32>
    tpu.vector_store %arg5[%c0_12, %c0_13, %c0_14], %17 {strides = array<i32>} : memref<1x8x1xf32, #tpu.memory_space<vmem>>, vector<1x8x1xf32>,
    %c0_15 = arith.constant 0 : index
    %c0_16 = arith.constant 0 : index
    %c0_17 = arith.constant 0 : index
    %18 = vector.load %arg6[%c0_15, %c0_16, %c0_17] : memref<1x8x1xf32, #tpu.memory_space<vmem>>, vector<1x8x1xf32>
    %19 = vector.shape_cast %18 : vector<1x8x1xf32> to vector<8x1xf32>
    %20 = arith.mulf %6, %6 : vector<8x256xf32>
    %cst_18 = arith.constant dense<0.000000e+00> : vector<8xf32>
    %21 = vector.multi_reduction <add>, %20, %cst_18 [1] : vector<8x256xf32> to vector<8xf32>
    %22 = vector.shape_cast %21 : vector<8xf32> to vector<8x1xf32>
    %23 = arith.addf %19, %22 : vector<8x1xf32>
    %c0_19 = arith.constant 0 : index
    %c0_20 = arith.constant 0 : index
    %c0_21 = arith.constant 0 : index
    %24 = vector.load %arg6[%c0_19, %c0_20, %c0_21] : memref<1x8x1xf32, #tpu.memory_space<vmem>>, vector<1x8x1xf32>
    %25 = vector.shape_cast %24 : vector<1x8x1xf32> to vector<8x1xf32>
    %26 = vector.shape_cast %23 : vector<8x1xf32> to vector<1x8x1xf32>
    tpu.vector_store %arg6[%c0_19, %c0_20, %c0_21], %26 {strides = array<i32>} : memref<1x8x1xf32, #tpu.memory_space<vmem>>, vector<1x8x1xf32>,
    return
  }
  func.func @transform_0(%arg0: i32, %arg1: i32) -> (i32, i32, i32) {
    %c0_i32 = arith.constant 0 : i32
    %c0_i32_0 = arith.constant 0 : i32
    return %arg0, %c0_i32, %arg1 : i32, i32, i32
  }
  func.func @transform_1(%arg0: i32, %arg1: i32) -> (i32, i32) {
    %c0_i32 = arith.constant 0 : i32
    %c0_i32_0 = arith.constant 0 : i32
    %c0_i32_1 = arith.constant 0 : i32
    return %c0_i32, %c0_i32_0 : i32, i32
  }
  func.func @transform_2(%arg0: i32, %arg1: i32) -> (i32, i32, i32) {
    %c0_i32 = arith.constant 0 : i32
    %c0_i32_0 = arith.constant 0 : i32
    return %arg0, %c0_i32, %arg1 : i32, i32, i32
  }
  func.func @transform_3(%arg0: i32, %arg1: i32) -> (i32, i32, i32) {
    %c0_i32 = arith.constant 0 : i32
    %c0_i32_0 = arith.constant 0 : i32
    %c0_i32_1 = arith.constant 0 : i32
    return %arg0, %c0_i32, %c0_i32_0 : i32, i32, i32
  }
  func.func @transform_4(%arg0: i32, %arg1: i32) -> (i32, i32, i32) {
    %c0_i32 = arith.constant 0 : i32
    %c0_i32_0 = arith.constant 0 : i32
    %c0_i32_1 = arith.constant 0 : i32
    return %arg0, %c0_i32, %c0_i32_0 : i32, i32, i32
  }
}

module attributes {stable_mosaic.version = 11 : i64} {
  func.func @_bn_relu_kernel(%arg0: i32, %arg1: i32, %arg2: memref<1x8x256xf32, #tpu.memory_space<vmem>>, %arg3: memref<8x1xf32, #tpu.memory_space<vmem>>, %arg4: memref<8x1xf32, #tpu.memory_space<vmem>>, %arg5: memref<1x8x256xf32, #tpu.memory_space<vmem>>) attributes {dimension_semantics = [#tpu.dimension_semantics<parallel>, #tpu.dimension_semantics<parallel>], iteration_bounds = array<i64: 2, 1>, scalar_prefetch = 0 : i64, scratch_operands = 0 : i64, tpu.core_type = #tpu.core_type<tc>, window_params = [{transform_indices = @transform_0, window_bounds = array<i64: 1, 8, 256>}, {pipeline_mode = #tpu.pipeline_mode<synchronous>, transform_indices = @transform_1, window_bounds = array<i64: 8, 1>}, {pipeline_mode = #tpu.pipeline_mode<synchronous>, transform_indices = @transform_2, window_bounds = array<i64: 8, 1>}, {transform_indices = @transform_3, window_bounds = array<i64: 1, 8, 256>}]} {
    %c0 = arith.constant 0 : index
    %c0_0 = arith.constant 0 : index
    %c0_1 = arith.constant 0 : index
    %0 = vector.load %arg2[%c0, %c0_0, %c0_1] : memref<1x8x256xf32, #tpu.memory_space<vmem>>, vector<1x8x256xf32>
    %1 = vector.shape_cast %0 : vector<1x8x256xf32> to vector<8x256xf32>
    %c0_2 = arith.constant 0 : index
    %c0_3 = arith.constant 0 : index
    %2 = vector.load %arg3[%c0_2, %c0_3] : memref<8x1xf32, #tpu.memory_space<vmem>>, vector<8x1xf32>
    %3 = vector.broadcast %2 : vector<8x1xf32> to vector<8x256xf32>
    %4 = arith.mulf %1, %3 : vector<8x256xf32>
    %c0_4 = arith.constant 0 : index
    %c0_5 = arith.constant 0 : index
    %5 = vector.load %arg4[%c0_4, %c0_5] : memref<8x1xf32, #tpu.memory_space<vmem>>, vector<8x1xf32>
    %6 = vector.broadcast %5 : vector<8x1xf32> to vector<8x256xf32>
    %7 = arith.addf %4, %6 : vector<8x256xf32>
    %cst = arith.constant 0.000000e+00 : f32
    %8 = vector.broadcast %cst : f32 to vector<8x256xf32>
    %9 = arith.maximumf %7, %8 : vector<8x256xf32>
    %c0_6 = arith.constant 0 : index
    %c0_7 = arith.constant 0 : index
    %c0_8 = arith.constant 0 : index
    %10 = vector.load %arg5[%c0_6, %c0_7, %c0_8] : memref<1x8x256xf32, #tpu.memory_space<vmem>>, vector<1x8x256xf32>
    %11 = vector.shape_cast %10 : vector<1x8x256xf32> to vector<8x256xf32>
    %12 = vector.shape_cast %9 : vector<8x256xf32> to vector<1x8x256xf32>
    tpu.vector_store %arg5[%c0_6, %c0_7, %c0_8], %12 {strides = array<i32>} : memref<1x8x256xf32, #tpu.memory_space<vmem>>, vector<1x8x256xf32>,
    return
  }
  func.func @transform_0(%arg0: i32, %arg1: i32) -> (i32, i32, i32) {
    %c0_i32 = arith.constant 0 : i32
    %c0_i32_0 = arith.constant 0 : i32
    return %arg0, %c0_i32, %arg1 : i32, i32, i32
  }
  func.func @transform_1(%arg0: i32, %arg1: i32) -> (i32, i32) {
    %c0_i32 = arith.constant 0 : i32
    %c0_i32_0 = arith.constant 0 : i32
    %c0_i32_1 = arith.constant 0 : i32
    return %c0_i32, %c0_i32_0 : i32, i32
  }
  func.func @transform_2(%arg0: i32, %arg1: i32) -> (i32, i32) {
    %c0_i32 = arith.constant 0 : i32
    %c0_i32_0 = arith.constant 0 : i32
    %c0_i32_1 = arith.constant 0 : i32
    return %c0_i32, %c0_i32_0 : i32, i32
  }
  func.func @transform_3(%arg0: i32, %arg1: i32) -> (i32, i32, i32) {
    %c0_i32 = arith.constant 0 : i32
    %c0_i32_0 = arith.constant 0 : i32
    return %arg0, %c0_i32, %arg1 : i32, i32, i32
  }
}

</mosaic_0001>

<bundles_post_ra>
// kernel: conv2d_bn_relu.2
= control target key start
LH: loop header
LB: loop body
LE: loop exit
PB: predicated region body
PF: predicated region fallthrough
CT: control target
= control target key end

     0   :  { %s624_s15 = smov 0   ;;  %s626_s16 = smov 0   ;;  %s675_s0 = inlined_call_operand.vmem [shape: f32[2,36,256], index: 0, kind: input, shape index: {}]   ;;  %s676_s1 = inlined_call_operand.vmem [shape: f32[8,36], index: 1, kind: input, shape index: {}]   ;;  %s677_s2 = inlined_call_operand.vmem [shape: f32[2,8,256], index: 2, kind: output, shape index: {0}]   ;;  %s678_s3 = inlined_call_operand.vmem [shape: f32[2,8,1], index: 3, kind: output, shape index: {1}]   ;;  %s679_s4 = inlined_call_operand.vmem [shape: f32[2,8,1], index: 4, kind: output, shape index: {2}]  }
   0x1   :  { %s628_s17 = smov 0  }
   0x2 LB: > { %s27_s18 = sadd.s32 1, %s592_s16  ;;  %p528_p0 = scmp.ge.s32.totalorder %s596_s17, 1  ;;  %s596_s17 = sphi %s628_s17, %s15_s17   ;;  %s592_s16 = sphi %s626_s16, %s681_s16   ;;  %s588_s15 = sphi %s624_s15, %s680_s15  }
   0x3   : > { %p29_p1 = scmp.ge.s32.totalorder %s27_s18, 2  ;;  %p188_p2 = scmp.lt.s32.totalorder %s596_s17, 3 }
   0x5   : > { %s683_s18 = smov (%p29_p1, %s27_s18), 0  ;;  %p189_p3 = pnand %p528_p0, %p188_p2 }
   0x6   : > { %p231_p4 = scmp.lt.s32.totalorder (!%p189_p3), %s588_s15, 1  ;;  %v598_v0 = vmov (!%p189_p3), 0.0   ;;  %vm280_vm0 = vcmask (!%p189_p3), 1043456   ;;  %v265_v15 = vld [vmem:[%s676_s1] sm:$0xff] (!%p189_p3)  ;;  %vm276_vm1 = vcmask (!%p189_p3), 293888   ;;  %vm262_vm2 = vcmask (!%p189_p3), 7168  }
   0x7   : > { %192 = sbr.rel (%p189_p3) target bundleno = 395 (0x18b), region = 28  ;;  %351 = vmatprep.mubr.f32.mxu0 (!%p189_p3), %v598_v0 }
   0xe   : > { %s685_s15 = smov (!%p231_p4, %s588_s15), 1 }
   0xf   : > { %s548_s19 = smul.u32 80, %s685_s15  ;;  %s532_s25 = sshll.u32 %s685_s15, 3 }
  0x10   : > { %s253_s28 = scalar_lea.vmem %s678_s3, %s532_s25  ;;  %s539_s29 = sshll.u32 %s685_s15, 4 }
  0x11   : > { %s238_s22 = scalar_lea.vmem %s675_s0, %s548_s19  ;;  %263 = vst.msk [vmem:[%s253_s28] sm:$0xff] %vm262_vm2, %v598_v0  ;;  %s248_s6 = scalar_lea.vmem %s677_s2, %s539_s29 }
  0x12   : > { %v267_v1 = vld [vmem:[%s238_s22 + $0x8] sm:$0xff]  ;;  %v269_v2 = vld [vmem:[%s238_s22 + $0x18] sm:$0xff]  ;;  %v266_v3 = vld [vmem:[%s238_s22] sm:$0xff]  ;;  %s257_s9 = scalar_lea.vmem %s679_s4, %s532_s25 }
  0x13   : > { %v540_v4 = vpack.c.bf16 %v269_v2, %v267_v1  ;;  %v268_v5 = vld [vmem:[%s238_s22 + $0x10] sm:$0xff]  ;;  %v271_v6 = vld [vmem:[%s238_s22 + $0x28] sm:$0xff]  ;;  %v273_v7 = vld [vmem:[%s238_s22 + $0x38] sm:$0xff]  ;;  %264 = vst.msk [vmem:[%s257_s9] sm:$0xff] %vm262_vm2, %v598_v0 }
  0x14   : > { %v542_v8 = vpack.c.bf16 %v268_v5, %v266_v3  ;;  %v544_v9 = vpack.c.bf16 %v273_v7, %v271_v6  ;;  %v270_v10 = vld [vmem:[%s238_s22 + $0x20] sm:$0xff]  ;;  %v272_v11 = vld [vmem:[%s238_s22 + $0x30] sm:$0xff]  ;;  %v275_v13 = vld [vmem:[%s238_s22 + $0x48] sm:$0xf] }
  0x15   : > { %541 = vmatprep.subr.bf16.mxu0 %v540_v4  ;;  %v546_v12 = vpack.c.bf16 %v272_v11, %v270_v10  ;;  %v274_v14 = vld [vmem:[%s238_s22 + $0x40] sm:$0xf] }
  0x16   : > { %543 = vmatpush1.bf16.msra.mxu0 %v542_v8 }
  0x17   : > { %545 = vmatprep.subr.bf16.mxu0 %v544_v9 }
  0x18   : > { %v360_v22 = vld [vmem:[%s253_s28] sm:$0xff] }
  0x1a   : > { %547 = vmatpush1.bf16.msra.mxu0 %v546_v12  ;;  %v367_v25 = vld [vmem:[%s257_s9] sm:$0xff] }
  0x1b   : > { %534 = vmatprep.subr.msk.mxu0 %vm280_vm0, %v275_v13 }
  0x1e   : > { %535 = vmatpush1.msk.msra.mxu0 %vm280_vm0, %v274_v14 }
  0x1f   : > { %536 = vmatmul.mubr.msk.f32.vlgmr.msra.gmra.mrb[0].mxu0 %vm276_vm1, %v265_v15 }
  0xf2   : > { %v353_v16 = vpop.f32.mrb[0].mxu0 }
  0xf3   : > { %v355_v17 = vpop.f32.mrb[1].mxu0  ;;  %358 = vst [vmem:[%s248_s6] sm:$0xff] %v353_v16  ;;  %v368_v18 = vmul.f32 %v353_v16, %v353_v16 }
  0xf4   : > { %359 = vst [vmem:[%s248_s6 + $0x8] sm:$0xff] %v355_v17  ;;  %v369_v19 = vmul.f32 %v355_v17, %v355_v17  ;;  %v361_v20 = vadd.f32 %v355_v17, %v353_v16 }
  0xf6   : > { %362 = vadd.xlane.f32.xlu0 %v361_v20  ;;  %v370_v21 = vadd.f32 %v369_v19, %v368_v18 }
  0xfa   : > { %371 = vadd.xlane.f32.xlu0 %v370_v21 }
 0x183   : > { %v363_v23 = vpop.xlane.xlu0 %362 }
 0x184   : > { %v364_v24 = vadd.f32 %v363_v23, %v360_v22 }
 0x186   : > { %366 = vst.msk [vmem:[%s253_s28] sm:$0xff] %vm262_vm2, %v364_v24 }
 0x187   : > { %v372_v26 = vpop.xlane.xlu0 %371 }
 0x188   : > { %v373_v27 = vadd.f32 %v372_v26, %v367_v25 }
 0x18a   : > { %374 = vst.msk [vmem:[%s257_s9] sm:$0xff] %vm262_vm2, %v373_v27 }
 0x18b PF: > { %s15_s17 = sadd.s32 1, %s596_s17   ;;  %s680_s15 = smov %s592_s16 }
 0x18c   : > { %p12_p5 = scmp.ge.s32.totalorder %s15_s17, 4   ;;  %s681_s16 = smov %s683_s18 }
 0x18e   :  { %14 = sbr.rel (!%p12_p5) target bundleno = 2 (0x2), region = 86 }

// kernel: conv2d_bn_relu.3
= control target key start
LH: loop header
LB: loop body
LE: loop exit
PB: predicated region body
PF: predicated region fallthrough
CT: control target
= control target key end

     0   :  { %s403_s12 = smov 0   ;;  %s405_s13 = smov 0   ;;  %s442_s0 = inlined_call_operand.vmem [shape: f32[2,8,256], index: 0, kind: input, shape index: {}]   ;;  %s443_s1 = inlined_call_operand.vmem [shape: f32[8,1], index: 1, kind: input, shape index: {}]   ;;  %s444_s2 = inlined_call_operand.vmem [shape: f32[8,1], index: 2, kind: input, shape index: {}]   ;;  %s445_s3 = inlined_call_operand.vmem [shape: f32[2,8,256], index: 3, kind: output, shape index: {}]  }
   0x1   :  { %s407_s14 = smov 0  }
   0x2 LB: > { %s25_s15 = sadd.s32 1, %s376_s13  ;;  %p323_p0 = scmp.ge.s32.totalorder %s380_s14, 1  ;;  %s380_s14 = sphi %s407_s14, %s13_s14   ;;  %s376_s13 = sphi %s405_s13, %s447_s13   ;;  %s372_s12 = sphi %s403_s12, %s446_s12  }
   0x3   : > { %p27_p1 = scmp.ge.s32.totalorder %s25_s15, 2  ;;  %p158_p2 = scmp.lt.s32.totalorder %s380_s14, 3 }
   0x5   : > { %s449_s15 = smov (%p27_p1, %s25_s15), 0  ;;  %p159_p3 = pnand %p323_p0, %p158_p2 }
   0x6   : > { %v212_v0 = vld [vmem:[%s443_s1] sm:$0xff] (!%p159_p3)  ;;  %v382_v1 = vmov (!%p159_p3), 0   ;;  %p191_p4 = scmp.lt.s32.totalorder (!%p159_p3), %s372_s12, 1 }
   0x7   : > { %162 = sbr.rel (%p159_p3) target bundleno = 145 (0x91), region = 32  ;;  %357 = vset.pattern.permute.xlu0 (!%p159_p3), %v382_v1  ;;  %v220_v2 = vld [vmem:[%s444_s2] sm:$0xff] (!%p159_p3) }
   0x8   : > { %215 = vperm.xlu0 (!%p159_p3), %357, %v212_v0  }
   0xc   : > { %223 = vperm.xlu0 (!%p159_p3), %357, %v220_v2  }
   0xe   : > { %s451_s12 = smov (!%p191_p4, %s372_s12), 1 }
   0xf   : > { %s330_s20 = sshll.u32 %s451_s12, 4 }
  0x10   : > { %s198_s23 = scalar_lea.vmem %s442_s0, %s330_s20  ;;  %s208_s26 = scalar_lea.vmem %s445_s3, %s330_s20 }
  0x11   : > { %v210_v4 = vld [vmem:[%s198_s23] sm:$0xff]  ;;  %v211_v5 = vld [vmem:[%s198_s23 + $0x8] sm:$0xff] }
  0x87   : > { %v216_v3 = vpop.permute.xlu0 %215 }
  0x88   : > { %v218_v6 = vmul.f32 %v216_v3, %v210_v4  ;;  %v219_v7 = vmul.f32 %v216_v3, %v211_v5 }
  0x8b   : > { %v224_v8 = vpop.permute.xlu0 %223 }
  0x8c   : > { %v226_v9 = vadd.f32 %v224_v8, %v218_v6  ;;  %v227_v10 = vadd.f32 %v224_v8, %v219_v7 }
  0x8e   : > { %v228_v11 = vmax.f32 %v226_v9, 0.0  ;;  %v229_v12 = vmax.f32 %v227_v10, 0.0 }
  0x90   : > { %230 = vst [vmem:[%s208_s26] sm:$0xff] %v228_v11  ;;  %231 = vst [vmem:[%s208_s26 + $0x8] sm:$0xff] %v229_v12 }
  0x91 PF: > { %s13_s14 = sadd.s32 1, %s380_s14   ;;  %s446_s12 = smov %s376_s13 }
  0x92   : > { %p10_p5 = scmp.ge.s32.totalorder %s13_s14, 4   ;;  %s447_s13 = smov %s449_s15 }
  0x94   :  { %12 = sbr.rel (!%p10_p5) target bundleno = 2 (0x2), region = 62 }

</bundles_post_ra>
